<compile_context>
chip_gen: v7x
topology: tpu7x:2x2x1
jax: 0.10.0
libtpu: 0.0.40
codegen_flags: <defaults>
</compile_context>

<pallas_src>
import functools

import jax
import jax.numpy as jnp
from jax.experimental import pallas as pl
from jax.experimental.pallas import tpu as pltpu

# ---------------- config (small synthetic BERT-ish sizes) ----------------
B = 2
S = 16
HIDDEN = 128
VOCAB = 512
LN_EPS = 1e-12

_VMEM_TILE_BUDGET = 40 * 1024 * 1024   # conservative: fits v7x 64 MiB/TC with headroom


# ---------------- tile sizing ----------------
def _vmem_footprint_bytes(row_tile, hidden, vocab_tile):
    """Approximate VMEM working set (double-buffered streamed blocks +
    resident transform params + bf16 activation scratch)."""
    streamed = 2 * (hidden * vocab_tile * 2      # w_dec tile (bf16)
                    + vocab_tile * 4             # b_dec tile (f32)
                    + row_tile * vocab_tile * 4  # logits tile (f32)
                    + row_tile * hidden * 4)     # x row tile (f32)
    resident = 2 * (hidden * hidden + 3 * hidden) * 4   # w_t, b_t, gamma, beta
    scratch = row_tile * hidden * 2                     # bf16 h scratch
    return streamed + resident + scratch


def _choose_tiles(n_rows, hidden, vocab, vmem_budget=_VMEM_TILE_BUDGET):
    # Rows: feed the MXU as many rows as possible (256 = v6e/v7x MXU height);
    # never more than the (sublane-rounded) row count.  For the toy N=32 this
    # is 32, i.e. one row tile.
    row_tile = min(256, max(8, (n_rows // 8) * 8))
    # Vocab: lane-dense multiple of 128 (unmasked vst), as wide as the VMEM
    # budget allows.  For the toy V=512 this is the full vocab -> one step.
    vocab_tile = min(2048, max(128, (vocab // 128) * 128))
    while (vocab_tile > 128 and
           _vmem_footprint_bytes(row_tile, hidden, vocab_tile) > vmem_budget):
        vocab_tile -= 128
    return row_tile, vocab_tile


# ---------------- fused kernel ----------------
def _lm_head_kernel(x_ref, wt_ref, bt_ref, g_ref, beta_ref, wd_ref, bd_ref,
                    out_ref, h_scratch, *, gelu_approximate):
    # Transform (dense -> gelu -> layernorm): computed once per row tile at
    # vocab step 0, stored as bf16 in VMEM scratch and reused (not recomputed,
    # not recast) across all vocab tiles of this row tile.
    @pl.when(pl.program_id(1) == 0)
    def _():
        h = jnp.dot(x_ref[...], wt_ref[...],
                    preferred_element_type=jnp.float32) + bt_ref[...]
        # Exact erf GELU matches torch.nn.functional.gelu (ACT2FN['gelu']).
        h = jax.nn.gelu(h, approximate=gelu_approximate)
        # Single-pass LayerNorm: E[h] and E[h^2] together, then one fused
        # scale/shift (scale = g*rsqrt(var+eps), shift = beta - mean*scale).
        mean = jnp.mean(h, axis=-1, keepdims=True)
        mean2 = jnp.mean(h * h, axis=-1, keepdims=True)
        var = mean2 - mean * mean
        scale = g_ref[...] * jax.lax.rsqrt(var + LN_EPS)
        shift = beta_ref[...] - mean * scale
        h_scratch[...] = (h * scale + shift).astype(h_scratch.dtype)

    # Decoder matmul for this [row_tile, vocab_tile] block:
    # bf16 x bf16 operands, f32 MXU accumulation, + vocab bias.
    out_ref[...] = (jnp.dot(h_scratch[...], wd_ref[...],
                            preferred_element_type=jnp.float32)
                    + bd_ref[...]).astype(out_ref.dtype)


def bert_lm_prediction_head(params, hidden_states, *, gelu_approximate=False):
    """hidden_states: [B, S, HIDDEN] -> logits [B, S, VOCAB]."""
    Bq, Sq, H = hidden_states.shape
    N = Bq * Sq
    V = params["w_dec_bf16"].shape[1]
    x = hidden_states.reshape(N, H)

    row_tile, vocab_tile = _choose_tiles(N, H, V)
    n_row = pl.cdiv(N, row_tile)
    n_vocab = pl.cdiv(V, vocab_tile)

    # Scoped-VMEM limit sized from the actual working set (with headroom),
    # capped well below v7x's 64 MiB physical per-TC VMEM.
    footprint = _vmem_footprint_bytes(row_tile, H, vocab_tile)
    vmem_limit = int(min(48 * 1024 * 1024,
                         max(2 * footprint, 16 * 1024 * 1024)))

    kernel = functools.partial(_lm_head_kernel,
                               gelu_approximate=gelu_approximate)

    logits = pl.pallas_call(
        kernel,
        out_shape=jax.ShapeDtypeStruct((N, V), jnp.float32),
        grid_spec=pltpu.PrefetchScalarGridSpec(
            num_scalar_prefetch=0,
            grid=(n_row, n_vocab),
            in_specs=[
                pl.BlockSpec((row_tile, H), lambda i, j: (i, 0)),     # x rows
                pl.BlockSpec((H, H), lambda i, j: (0, 0)),            # transform W (f32)
                pl.BlockSpec((1, H), lambda i, j: (0, 0)),            # transform b
                pl.BlockSpec((1, H), lambda i, j: (0, 0)),            # LN gamma
                pl.BlockSpec((1, H), lambda i, j: (0, 0)),            # LN beta
                pl.BlockSpec((H, vocab_tile), lambda i, j: (0, j)),   # decoder W tile (bf16)
                pl.BlockSpec((1, vocab_tile), lambda i, j: (0, j)),   # decoder b tile
            ],
            out_specs=pl.BlockSpec((row_tile, vocab_tile), lambda i, j: (i, j)),
            scratch_shapes=[pltpu.VMEM((row_tile, H), jnp.bfloat16)],
        ),
        compiler_params=pltpu.CompilerParams(
            dimension_semantics=("parallel", "arbitrary"),
            vmem_limit_bytes=vmem_limit,
        ),
    )(x, params["w_t"], params["b_t"], params["ln_g"], params["ln_b"],
      params["w_dec_bf16"], params["b_dec"])

    return logits.reshape(Bq, Sq, V)


# ---------------- pure-JAX reference (for correctness check) ----------------
def reference_forward(params, hidden_states, *, gelu_approximate=False):
    Bq, Sq, H = hidden_states.shape
    x = hidden_states.reshape(-1, H)
    h = x @ params["w_t"] + params["b_t"]
    h = jax.nn.gelu(h, approximate=gelu_approximate)
    mean = jnp.mean(h, axis=-1, keepdims=True)
    var = jnp.mean(jnp.square(h - mean), axis=-1, keepdims=True)
    h = (h - mean) * jax.lax.rsqrt(var + LN_EPS)
    h = h * params["ln_g"] + params["ln_b"]
    logits = h @ params["w_dec"] + params["b_dec"]   # full-precision module semantics
    return logits.reshape(Bq, Sq, -1)


# ---------------- parameter construction ----------------
def init_params(key):
    k1, k2, k3, k4, k5, k6 = jax.random.split(key, 6)
    scale = 0.02
    w_dec = scale * jax.random.normal(k2, (HIDDEN, VOCAB), dtype=jnp.float32)
    return {
        # transform dense: [in, out]; biases / LN params pre-reshaped to (1, N)
        "w_t": scale * jax.random.normal(k1, (HIDDEN, HIDDEN), dtype=jnp.float32),
        "b_t": 0.01 * jax.random.normal(k3, (1, HIDDEN), dtype=jnp.float32),
        "ln_g": 1.0 + 0.05 * jax.random.normal(k4, (1, HIDDEN), dtype=jnp.float32),
        "ln_b": 0.01 * jax.random.normal(k5, (1, HIDDEN), dtype=jnp.float32),
        # decoder: [hidden, vocab] + tied vocab bias.  f32 master copy for the
        # reference; bf16 copy pre-cast ONCE for the HBM-bound weight stream.
        "w_dec": w_dec,
        "w_dec_bf16": w_dec.astype(jnp.bfloat16),
        "b_dec": 0.01 * jax.random.normal(k6, (1, VOCAB), dtype=jnp.float32),
    }


# ---------------- driver ----------------
if __name__ == "__main__":
    key = jax.random.PRNGKey(0)
    k_params, k_x = jax.random.split(key)

    params = init_params(k_params)
    hidden_states = jax.random.normal(k_x, (B, S, HIDDEN), dtype=jnp.float32)

    def run(approx):
        fn = jax.jit(functools.partial(bert_lm_prediction_head,
                                       gelu_approximate=approx))
        out = fn(params, hidden_states)
        jax.block_until_ready(out)
        return out

    try:
        gelu_approx = False          # exact erf GELU == torch.nn.functional.gelu
        logits = run(gelu_approx)
    except Exception:
        # TODO(synk): erf lowering unavailable on this Mosaic build; fall back
        #             to tanh GELU (tiny numeric deviation from torch F.gelu).
        gelu_approx = True
        logits = run(gelu_approx)

    ref = reference_forward(params, hidden_states, gelu_approximate=gelu_approx)

    assert logits.shape == (B, S, VOCAB)
    assert bool(jnp.all(jnp.isfinite(logits)))
    max_err = float(jnp.max(jnp.abs(logits - ref)))
    assert max_err < 1e-2, f"max abs error {max_err}"
    print("KERNEL_OK")
</pallas_src>

<mosaic_0001>
module attributes {stable_mosaic.version = 11 : i64} {
  func.func @_lm_head_kernel(%arg0: i32, %arg1: i32, %arg2: memref<32x128xf32, #tpu.memory_space<vmem>>, %arg3: memref<128x128xf32, #tpu.memory_space<vmem>>, %arg4: memref<1x128xf32, #tpu.memory_space<vmem>>, %arg5: memref<1x128xf32, #tpu.memory_space<vmem>>, %arg6: memref<1x128xf32, #tpu.memory_space<vmem>>, %arg7: memref<128x512xbf16, #tpu.memory_space<vmem>>, %arg8: memref<1x512xf32, #tpu.memory_space<vmem>>, %arg9: memref<32x512xf32, #tpu.memory_space<vmem>>, %arg10: memref<32x128xbf16, #tpu.memory_space<vmem>>) attributes {dimension_semantics = [#tpu.dimension_semantics<parallel>, #tpu.dimension_semantics<arbitrary>], iteration_bounds = array<i64: 1, 1>, scalar_prefetch = 0 : i64, scratch_operands = 1 : i64, tpu.core_type = #tpu.core_type<tc>, window_params = [{transform_indices = @transform_0, window_bounds = array<i64: 32, 128>}, {pipeline_mode = #tpu.pipeline_mode<synchronous>, transform_indices = @transform_1, window_bounds = array<i64: 128, 128>}, {pipeline_mode = #tpu.pipeline_mode<synchronous>, transform_indices = @transform_2, window_bounds = array<i64: 1, 128>}, {pipeline_mode = #tpu.pipeline_mode<synchronous>, transform_indices = @transform_3, window_bounds = array<i64: 1, 128>}, {pipeline_mode = #tpu.pipeline_mode<synchronous>, transform_indices = @transform_4, window_bounds = array<i64: 1, 128>}, {transform_indices = @transform_5, window_bounds = array<i64: 128, 512>}, {transform_indices = @transform_6, window_bounds = array<i64: 1, 512>}, {transform_indices = @transform_7, window_bounds = array<i64: 32, 512>}]} {
    %c0_i32 = arith.constant 0 : i32
    %0 = arith.cmpi eq, %arg1, %c0_i32 : i32
    %1 = arith.extui %0 : i1 to i32
    %c0_i32_0 = arith.constant 0 : i32
    %2 = arith.cmpi ne, %1, %c0_i32_0 : i32
    scf.if %2 {
      %c0_8 = arith.constant 0 : index
      %c0_9 = arith.constant 0 : index
      %10 = vector.load %arg2[%c0_8, %c0_9] : memref<32x128xf32, #tpu.memory_space<vmem>>, vector<32x128xf32>
      %c0_10 = arith.constant 0 : index
      %c0_11 = arith.constant 0 : index
      %11 = vector.load %arg3[%c0_10, %c0_11] : memref<128x128xf32, #tpu.memory_space<vmem>>, vector<128x128xf32>
      %cst_12 = arith.constant dense<0.000000e+00> : vector<32x128xf32>
      %12 = tpu.matmul %10, %11, %cst_12 {dimension_numbers = #tpu.dot_dimension_numbers<[1], [0], [0], [1], [0, 0, 1, 1], [], []>} : vector<32x128xf32>, vector<128x128xf32>, vector<32x128xf32> -> vector<32x128xf32>
      %c0_13 = arith.constant 0 : index
      %c0_14 = arith.constant 0 : index
      %13 = vector.load %arg4[%c0_13, %c0_14] : memref<1x128xf32, #tpu.memory_space<vmem>>, vector<1x128xf32>
      %14 = vector.broadcast %13 : vector<1x128xf32> to vector<32x128xf32>
      %15 = arith.addf %12, %14 : vector<32x128xf32>
      %16 = arith.mulf %15, %15 : vector<32x128xf32>
      %17 = arith.mulf %15, %16 : vector<32x128xf32>
      %cst_15 = arith.constant 4.471500e-02 : f32
      %18 = vector.broadcast %cst_15 : f32 to vector<32x128xf32>
      %19 = arith.mulf %18, %17 : vector<32x128xf32>
      %20 = arith.addf %15, %19 : vector<32x128xf32>
      %cst_16 = arith.constant 0.797884583 : f32
      %21 = vector.broadcast %cst_16 : f32 to vector<32x128xf32>
      %22 = arith.mulf %21, %20 : vector<32x128xf32>
      %23 = math.tanh %22 : vector<32x128xf32>
      %cst_17 = arith.constant 1.000000e+00 : f32
      %24 = vector.broadcast %cst_17 : f32 to vector<32x128xf32>
      %25 = arith.addf %24, %23 : vector<32x128xf32>
      %cst_18 = arith.constant 5.000000e-01 : f32
      %26 = vector.broadcast %cst_18 : f32 to vector<32x128xf32>
      %27 = arith.mulf %26, %25 : vector<32x128xf32>
      %28 = arith.mulf %15, %27 : vector<32x128xf32>
      %cst_19 = arith.constant dense<0.000000e+00> : vector<32xf32>
      %29 = vector.multi_reduction <add>, %28, %cst_19 [1] : vector<32x128xf32> to vector<32xf32>
      %30 = vector.shape_cast %29 : vector<32xf32> to vector<32x1xf32>
      %cst_20 = arith.constant 1.280000e+02 : f32
      %31 = vector.broadcast %cst_20 : f32 to vector<32x1xf32>
      %32 = arith.divf %30, %31 : vector<32x1xf32>
      %33 = arith.mulf %28, %28 : vector<32x128xf32>
      %cst_21 = arith.constant dense<0.000000e+00> : vector<32xf32>
      %34 = vector.multi_reduction <add>, %33, %cst_21 [1] : vector<32x128xf32> to vector<32xf32>
      %35 = vector.shape_cast %34 : vector<32xf32> to vector<32x1xf32>
      %cst_22 = arith.constant 1.280000e+02 : f32
      %36 = vector.broadcast %cst_22 : f32 to vector<32x1xf32>
      %37 = arith.divf %35, %36 : vector<32x1xf32>
      %38 = arith.mulf %32, %32 : vector<32x1xf32>
      %39 = arith.subf %37, %38 : vector<32x1xf32>
      %c0_23 = arith.constant 0 : index
      %c0_24 = arith.constant 0 : index
      %40 = vector.load %arg5[%c0_23, %c0_24] : memref<1x128xf32, #tpu.memory_space<vmem>>, vector<1x128xf32>
      %cst_25 = arith.constant 9.99999996E-13 : f32
      %41 = vector.broadcast %cst_25 : f32 to vector<32x1xf32>
      %42 = arith.addf %39, %41 : vector<32x1xf32>
      %43 = math.rsqrt %42 : vector<32x1xf32>
      %44 = vector.broadcast %40 : vector<1x128xf32> to vector<32x128xf32>
      %45 = vector.broadcast %43 : vector<32x1xf32> to vector<32x128xf32>
      %46 = arith.mulf %44, %45 : vector<32x128xf32>
      %c0_26 = arith.constant 0 : index
      %c0_27 = arith.constant 0 : index
      %47 = vector.load %arg6[%c0_26, %c0_27] : memref<1x128xf32, #tpu.memory_space<vmem>>, vector<1x128xf32>
      %48 = vector.broadcast %32 : vector<32x1xf32> to vector<32x128xf32>
      %49 = arith.mulf %48, %46 : vector<32x128xf32>
      %50 = vector.broadcast %47 : vector<1x128xf32> to vector<32x128xf32>
      %51 = arith.subf %50, %49 : vector<32x128xf32>
      %52 = arith.mulf %28, %46 : vector<32x128xf32>
      %53 = arith.addf %52, %51 : vector<32x128xf32>
      %54 = arith.truncf %53 : vector<32x128xf32> to vector<32x128xbf16>
      %c0_28 = arith.constant 0 : index
      %c0_29 = arith.constant 0 : index
      %55 = vector.load %arg10[%c0_28, %c0_29] : memref<32x128xbf16, #tpu.memory_space<vmem>>, vector<32x128xbf16>
      tpu.vector_store %arg10[%c0_28, %c0_29], %54 {strides = array<i32>} : memref<32x128xbf16, #tpu.memory_space<vmem>>, vector<32x128xbf16>,
    } else {
    }
    %c0 = arith.constant 0 : index
    %c0_1 = arith.constant 0 : index
    %3 = vector.load %arg10[%c0, %c0_1] : memref<32x128xbf16, #tpu.memory_space<vmem>>, vector<32x128xbf16>
    %c0_2 = arith.constant 0 : index
    %c0_3 = arith.constant 0 : index
    %4 = vector.load %arg7[%c0_2, %c0_3] : memref<128x512xbf16, #tpu.memory_space<vmem>>, vector<128x512xbf16>
    %cst = arith.constant dense<0.000000e+00> : vector<32x512xf32>
    %5 = tpu.matmul %3, %4, %cst {dimension_numbers = #tpu.dot_dimension_numbers<[1], [0], [0], [1], [0, 0, 1, 1], [], []>} : vector<32x128xbf16>, vector<128x512xbf16>, vector<32x512xf32> -> vector<32x512xf32>
    %c0_4 = arith.constant 0 : index
    %c0_5 = arith.constant 0 : index
    %6 = vector.load %arg8[%c0_4, %c0_5] : memref<1x512xf32, #tpu.memory_space<vmem>>, vector<1x512xf32>
    %7 = vector.broadcast %6 : vector<1x512xf32> to vector<32x512xf32>
    %8 = arith.addf %5, %7 : vector<32x512xf32>
    %c0_6 = arith.constant 0 : index
    %c0_7 = arith.constant 0 : index
    %9 = vector.load %arg9[%c0_6, %c0_7] : memref<32x512xf32, #tpu.memory_space<vmem>>, vector<32x512xf32>
    tpu.vector_store %arg9[%c0_6, %c0_7], %8 {strides = array<i32>} : memref<32x512xf32, #tpu.memory_space<vmem>>, vector<32x512xf32>,
    return
  }
  func.func @transform_0(%arg0: i32, %arg1: i32) -> (i32, i32) {
    %c0_i32 = arith.constant 0 : i32
    %c0_i32_0 = arith.constant 0 : i32
    return %arg0, %c0_i32 : i32, i32
  }
  func.func @transform_1(%arg0: i32, %arg1: i32) -> (i32, i32) {
    %c0_i32 = arith.constant 0 : i32
    %c0_i32_0 = arith.constant 0 : i32
    %c0_i32_1 = arith.constant 0 : i32
    return %c0_i32, %c0_i32_0 : i32, i32
  }
  func.func @transform_2(%arg0: i32, %arg1: i32) -> (i32, i32) {
    %c0_i32 = arith.constant 0 : i32
    %c0_i32_0 = arith.constant 0 : i32
    %c0_i32_1 = arith.constant 0 : i32
    return %c0_i32, %c0_i32_0 : i32, i32
  }
  func.func @transform_3(%arg0: i32, %arg1: i32) -> (i32, i32) {
    %c0_i32 = arith.constant 0 : i32
    %c0_i32_0 = arith.constant 0 : i32
    %c0_i32_1 = arith.constant 0 : i32
    return %c0_i32, %c0_i32_0 : i32, i32
  }
  func.func @transform_4(%arg0: i32, %arg1: i32) -> (i32, i32) {
    %c0_i32 = arith.constant 0 : i32
    %c0_i32_0 = arith.constant 0 : i32
    %c0_i32_1 = arith.constant 0 : i32
    return %c0_i32, %c0_i32_0 : i32, i32
  }
  func.func @transform_5(%arg0: i32, %arg1: i32) -> (i32, i32) {
    %c0_i32 = arith.constant 0 : i32
    %c0_i32_0 = arith.constant 0 : i32
    return %c0_i32, %arg1 : i32, i32
  }
  func.func @transform_6(%arg0: i32, %arg1: i32) -> (i32, i32) {
    %c0_i32 = arith.constant 0 : i32
    %c0_i32_0 = arith.constant 0 : i32
    return %c0_i32, %arg1 : i32, i32
  }
  func.func @transform_7(%arg0: i32, %arg1: i32) -> (i32, i32) {
    %c0_i32 = arith.constant 0 : i32
    return %arg0, %arg1 : i32, i32
  }
}

</mosaic_0001>

<bundles_post_ra>
// kernel: bert_lm_prediction_head.1
= control target key start
LH: loop header
LB: loop body
LE: loop exit
PB: predicated region body
PF: predicated region fallthrough
CT: control target
= control target key end

     0   :  { %12 = vsyncpa [#allocation4], 0  ;;  %s1228_s0 = inlined_call_operand.hbm [shape: f32[32,128], index: 0, kind: input, shape index: {}]   ;;  %s1229_s1 = inlined_call_operand.hbm [shape: f32[128,128], index: 1, kind: input, shape index: {}]   ;;  %s1230_s2 = inlined_call_operand.vmem [shape: f32[1,128], index: 2, kind: input, shape index: {}]   ;;  %s1231_s3 = inlined_call_operand.vmem [shape: f32[1,128], index: 3, kind: input, shape index: {}]   ;;  %s1232_s4 = inlined_call_operand.vmem [shape: f32[1,128], index: 4, kind: input, shape index: {}]   ;;  %s1233_s5 = inlined_call_operand.hbm [shape: bf16[128,512], index: 5, kind: input, shape index: {}]   ;;  %s1234_s6 = inlined_call_operand.hbm [shape: f32[1,512], index: 6, kind: input, shape index: {}]   ;;  %s1235_s7 = inlined_call_operand.hbm [shape: f32[32,512], index: 7, kind: output, shape index: {}]  }
   0x1   :  { %13 = vsyncpa [#allocation7], 0 }
   0x2   :  { %14 = vsyncpa [#allocation10], 0 }
   0x3   :  { %15 = vsyncpa [#allocation5], 0  ;;  %s1008_s24 = smov [#allocation6]   ;;  %s1009_s26 = smov [#allocation3]  }
   0x4   :  { %s33_s25 = sshll.u32 %s1008_s24, 4  ;;  %s21_s27 = sshll.u32 %s1009_s26, 4  ;;  %s34_s25 = int_to_ptr.vmem [resolvable:$true] %s33_s25  ;;  %s1060_s27 = int_to_ptr.vmem [resolvable:$true] %s21_s27 }
   0x5   :  { %s890_s30 = scalar_lea.hbm %s1229_s1, 2048 }
   0x6   :  { %p891_p0 = scmp.ne.s32.totalorder %s1229_s1, %s890_s30  ;;  %p894_p1 = scmp.lt.u32.totalorder %s890_s30, %s1229_s1 }
   0x8   :  { %p896_p2 = pnand %p894_p1, %p891_p0 }
   0xa   :  { %899 = shalt.err (!%p896_p2)
}
   0xb   :  { %s900_s12 = scalar_lea.vmem %s34_s25, 2048  ;;  %p905_p4 = scmp.lt.s32.totalorder %s34_s25, %s34_s25 }
   0xc   :  { %p901_p3 = scmp.ne.s32.totalorder %s34_s25, %s900_s12  ;;  %p906_p5 = scmp.lt.s32.totalorder %s900_s12, %s900_s12 }
   0xe   :  { %p907_p6 = por %p906_p5, %p905_p4 }
  0x10   :  { %p908_p7 = pnand %p907_p6, %p901_p3 }
  0x12   :  { %911 = shalt.err (!%p908_p7)
}
  0x13   :  { %s1010_s13 = smov 128   ;;  %s1011_s14 = smov 8  }
  0x14   :  { %39 = dma.hbm_to_vmem [thread:$0]  %s1229_s1, 2048, %s34_s25, [#allocation7], %s1010_s13, %s1010_s13, %s1011_s14  }
  0x15   :  { %s912_s19 = scalar_lea.hbm %s1228_s0, 512 }
  0x16   :  { %p913_p8 = scmp.ne.s32.totalorder %s1228_s0, %s912_s19  ;;  %p916_p9 = scmp.lt.u32.totalorder %s912_s19, %s1228_s0 }
  0x18   :  { %p918_p10 = pnand %p916_p9, %p913_p8 }
  0x1a   :  { %921 = shalt.err (!%p918_p10)
}
  0x1b   :  { %s922_s24 = scalar_lea.vmem %s1060_s27, 512  ;;  %p927_p12 = scmp.lt.s32.totalorder %s1060_s27, %s1060_s27 }
  0x1c   :  { %p923_p11 = scmp.ne.s32.totalorder %s1060_s27, %s922_s24  ;;  %p928_p13 = scmp.lt.s32.totalorder %s922_s24, %s922_s24 }
  0x1e   :  { %p929_p0 = por %p928_p13, %p927_p12 }
  0x20   :  { %p930_p1 = pnand %p929_p0, %p923_p11 }
  0x22   :  { %933 = shalt.err (!%p930_p1)
}
  0x23   :  { %27 = dma.hbm_to_vmem [thread:$0]  %s1228_s0, 512, %s1060_s27, [#allocation4], %s1010_s13, %s1010_s13, %s1011_s14  }
  0x24   :  { %s1012_s26 = smov [#allocation8]   ;;  %s934_s8 = scalar_lea.hbm %s1233_s5, 4096 }
  0x25   :  { %s51_s28 = sshll.u32 %s1012_s26, 4  ;;  %p935_p2 = scmp.ne.s32.totalorder %s1233_s5, %s934_s8  ;;  %s52_s28 = int_to_ptr.vmem [resolvable:$true] %s51_s28 }
  0x26   :  { %p938_p3 = scmp.lt.u32.totalorder %s934_s8, %s1233_s5 }
  0x28   :  { %p940_p4 = pnand %p938_p3, %p935_p2 }
  0x2a   :  { %943 = shalt.err (!%p940_p4)
}
  0x2b   :  { %s944_s15 = scalar_lea.vmem %s52_s28, 4096  ;;  %p949_p6 = scmp.lt.s32.totalorder %s52_s28, %s52_s28 }
  0x2c   :  { %p945_p5 = scmp.ne.s32.totalorder %s52_s28, %s944_s15  ;;  %p950_p7 = scmp.lt.s32.totalorder %s944_s15, %s944_s15 }
  0x2e   :  { %p951_p8 = por %p950_p7, %p949_p6 }
  0x30   :  { %p952_p9 = pnand %p951_p8, %p945_p5 }
  0x32   :  { %955 = shalt.err (!%p952_p9)
}
  0x33   :  { %s1013_s0 = smov 256   ;;  %s1014_s27 = smov 16  }
  0x34   :  { %57 = dma.hbm_to_vmem [thread:$0]  %s1233_s5, 4096, %s52_s28, [#allocation7], %s1013_s0, %s1013_s0, %s1014_s27  }
  0x35   :  { %s1015_s16 = smov [#allocation9]   ;;  %s956_s20 = scalar_lea.hbm %s1234_s6, 64 }
  0x36   :  { %s64_s17 = sshll.u32 %s1015_s16, 4  ;;  %p957_p10 = scmp.ne.s32.totalorder %s1234_s6, %s956_s20  ;;  %s65_s17 = int_to_ptr.vmem [resolvable:$true] %s64_s17 }
  0x37   :  { %p960_p11 = scmp.lt.u32.totalorder %s956_s20, %s1234_s6 }
  0x39   :  { %p962_p12 = pnand %p960_p11, %p957_p10 }
  0x3b   :  { %965 = shalt.err (!%p962_p12)
}
  0x3c   :  { %s966_s1 = scalar_lea.vmem %s65_s17, 64  ;;  %p971_p0 = scmp.lt.s32.totalorder %s65_s17, %s65_s17 }
  0x3d   :  { %p967_p13 = scmp.ne.s32.totalorder %s65_s17, %s966_s1  ;;  %p972_p1 = scmp.lt.s32.totalorder %s966_s1, %s966_s1 }
  0x3f   :  { %p973_p2 = por %p972_p1, %p971_p0 }
  0x41   :  { %p974_p3 = pnand %p973_p2, %p967_p13 }
  0x43   :  { %977 = shalt.err (!%p974_p3)
}
  0x44   :  { %67 = dma.hbm_to_vmem [thread:$0]  %s1234_s6, 64, %s65_s17, [#allocation10]  }
  0x45   :  { %1000 = dma.done.wait [#allocation4], 512  }
  0x46   :  { %1001 = vsyncadd [#allocation4], 4294966784 }
  0x47   :  { %1002 = dma.done.wait [#allocation7], 6144  }
  0x48   :  { %1003 = vsyncadd [#allocation7], 4294961152 }
  0x49   :  { %1004 = dma.done.wait [#allocation10], 64  }
  0x4a   :  { %1005 = vsyncadd [#allocation10], 4294967232  ;;  %v89_v0 = vld [vmem:[#allocation6] sm:$0xff]  ;;  %v90_v1 = vld [vmem:[#allocation6 + $0x8] sm:$0xff] }
  0x4b   :  { %v91_v2 = vld [vmem:[#allocation6 + $0x10] sm:$0xff]  ;;  %v766_v3 = vpack.c.bf16 %v90_v1, %v89_v0  ;;  %v92_v4 = vld [vmem:[#allocation6 + $0x18] sm:$0xff]  ;;  %v93_v6 = vld [vmem:[#allocation6 + $0x20] sm:$0xff] }
  0x4c   :  { %v770_v5 = vpack.c.bf16 %v92_v4, %v91_v2  ;;  %v94_v7 = vld [vmem:[#allocation6 + $0x28] sm:$0xff]  ;;  %v85_v9 = vld [vmem:[#allocation3] sm:$0xff]  ;;  %v95_v10 = vld [vmem:[#allocation6 + $0x30] sm:$0xff] }
  0x4d   :  { %767 = vmatprep.subr.bf16.mxu0 %v766_v3  ;;  %v774_v8 = vpack.c.bf16 %v94_v7, %v93_v6  ;;  %v96_v11 = vld [vmem:[#allocation6 + $0x38] sm:$0xff]  ;;  %760 = vmatprep.mubr.f32.mxu0 %v85_v9  ;;  %v97_v12 = vld [vmem:[#allocation6 + $0x40] sm:$0xff]  ;;  %v98_v13 = vld [vmem:[#allocation6 + $0x48] sm:$0xff] }
  0x4e   :  { %769 = vmatpush3.bf16.msra.mxu0 %v766_v3  ;;  %v778_v14 = vpack.c.bf16 %v96_v11, %v95_v10  ;;  %v99_v15 = vld [vmem:[#allocation6 + $0x50] sm:$0xff]  ;;  %v100_v16 = vld [vmem:[#allocation6 + $0x58] sm:$0xff]  ;;  %v782_v17 = vpack.c.bf16 %v98_v13, %v97_v12  ;;  %v101_v19 = vld [vmem:[#allocation6 + $0x60] sm:$0xff] }
  0x4f   :  { %771 = vmatprep.subr.bf16.mxu0 %v770_v5  ;;  %v786_v18 = vpack.c.bf16 %v100_v16, %v99_v15  ;;  %v102_v20 = vld [vmem:[#allocation6 + $0x68] sm:$0xff]  ;;  %v103_v22 = vld [vmem:[#allocation6 + $0x70] sm:$0xff]  ;;  %v104_v23 = vld [vmem:[#allocation6 + $0x78] sm:$0xff] }
  0x50   :  { %v790_v21 = vpack.c.bf16 %v102_v20, %v101_v19  ;;  %v794_v24 = vpack.c.bf16 %v104_v23, %v103_v22  ;;  %v86_v25 = vld [vmem:[#allocation3 + $0x8] sm:$0xff]  ;;  %v87_v26 = vld [vmem:[#allocation3 + $0x10] sm:$0xff]  ;;  %v88_v27 = vld [vmem:[#allocation3 + $0x18] sm:$0xff] }
  0x51   :  { %v673_v28 = vld [vmem:[%s1230_s2] ss:$0 sm:$0xff]  ;;  %v826_v13 = vld [vmem:[#allocation8 + $0x4] ss:$16 sps:$4 sm:$0xff]   ;;  %v1138_v15 = vld [vmem:[#allocation8 + $0xc] ss:$16 sps:$4 sm:$0xff]  }
  0x52   :  { %773 = vmatpush3.bf16.msra.mxu0 %v770_v5  ;;  %532 = vmatprep.subr.bf16.mxu1 %v826_v13  ;;  %v1140_v16 = vld [vmem:[#allocation8 + $0x8] ss:$16 sps:$4 sm:$0xff]   ;;  %v1144_v19 = vld [vmem:[#allocation8 + $0x2c] ss:$16 sps:$4 sm:$0xff]   ;;  %v840_v22 = vld [vmem:[#allocation8 + $0x40] ss:$16 sps:$4 sm:$0xff]  }
  0x53   :  { %775 = vmatprep.subr.bf16.mxu0 %v774_v8  ;;  %v1146_v20 = vld [vmem:[#allocation8 + $0x28] ss:$16 sps:$4 sm:$0xff]   ;;  %v1150_v23 = vld [vmem:[#allocation8 + $0x4c] ss:$16 sps:$4 sm:$0xff]   ;;  %v674_v13 = vld [vmem:[%s1231_s3] ss:$0 sm:$0xff] }
  0x54   :  { %s1017_s3 = smov [#allocation11]  }
  0x56   :  { %777 = vmatpush3.bf16.msra.mxu0 %v774_v8 }
  0x57   :  { %779 = vmatprep.subr.bf16.mxu0 %v778_v14 }
  0x5a   :  { %781 = vmatpush3.bf16.msra.mxu0 %v778_v14  ;;  %v828_v14 = vld [vmem:[#allocation8] ss:$16 sps:$4 sm:$0xff]  }
  0x5b   :  { %783 = vmatprep.subr.bf16.mxu0 %v782_v17  ;;  %533 = vmatpush1.bf16.msra.mxu1 %v828_v14 }
  0x5e   :  { %785 = vmatpush3.bf16.msra.mxu0 %v782_v17  ;;  %v832_v17 = vld [vmem:[#allocation8 + $0x24] ss:$16 sps:$4 sm:$0xff]  }
  0x5f   :  { %787 = vmatprep.subr.bf16.mxu0 %v786_v18  ;;  %534 = vmatprep.subr.bf16.mxu1 %v832_v17 }
  0x62   :  { %789 = vmatpush3.bf16.msra.mxu0 %v786_v18  ;;  %v834_v18 = vld [vmem:[#allocation8 + $0x20] ss:$16 sps:$4 sm:$0xff]  }
  0x63   :  { %791 = vmatprep.subr.bf16.mxu0 %v790_v21  ;;  %535 = vmatpush1.bf16.msra.mxu1 %v834_v18 }
  0x66   :  { %793 = vmatpush3.bf16.msra.mxu0 %v790_v21  ;;  %v838_v21 = vld [vmem:[#allocation8 + $0x44] ss:$16 sps:$4 sm:$0xff]  }
  0x67   :  { %795 = vmatprep.subr.bf16.mxu0 %v794_v24  ;;  %536 = vmatprep.subr.bf16.mxu1 %v838_v21 }
  0x68   :  { %537 = vmatpush1.bf16.msra.mxu1 %v840_v22  ;;  %v675_v22 = vld [vmem:[%s1232_s4] ss:$0 sm:$0xff]  ;;  %s659_s4 = sshll.u32 %s1017_s3, 4  ;;  %s660_s4 = int_to_ptr.vmem [resolvable:$true] %s659_s4 }
  0x69   :  { %s978_s8 = scalar_lea.vmem %s660_s4, 2048  ;;  %p983_p5 = scmp.lt.s32.totalorder %s660_s4, %s660_s4 }
  0x6a   :  { %797 = vmatpush3.bf16.msra.mxu0 %v794_v24  ;;  %v1152_v24 = vld [vmem:[#allocation8 + $0x48] ss:$16 sps:$4 sm:$0xff]   ;;  %p979_p4 = scmp.ne.s32.totalorder %s660_s4, %s978_s8  ;;  %p984_p6 = scmp.lt.s32.totalorder %s978_s8, %s978_s8 }
  0x6b   :  { %585 = vmatprep.subr.bf16.mxu0 %v1138_v15 }
  0x6c   :  { %p985_p7 = por %p984_p6, %p983_p5 }
  0x6d   :  { %761 = vmatmul.mubr.f32.vlgmr.msra.gmra.mrb[0].mxu0 %v86_v25  ;;  %v844_v25 = vld [vmem:[#allocation8 + $0x64] ss:$16 sps:$4 sm:$0xff]  }
  0x6e   :  { %763 = vmatprep.mubr.f32.mxu0 %v87_v26  ;;  %586 = vmatpush1.bf16.msra.mxu0 %v1140_v16  ;;  %v846_v26 = vld [vmem:[#allocation8 + $0x60] ss:$16 sps:$4 sm:$0xff]   ;;  %p986_p8 = pnand %p985_p7, %p979_p4 }
  0x6f   :  { %587 = vmatprep.subr.bf16.mxu0 %v1144_v19  ;;  %538 = vmatprep.subr.bf16.mxu1 %v844_v25 }
  0x70   :  { %539 = vmatpush1.bf16.msra.mxu1 %v846_v26 }
  0x71   :  { %764 = vmatmul.mubr.f32.gmra.mrb[2].mxu0 %v88_v27  ;;  %v1156_v27 = vld [vmem:[#allocation8 + $0x6c] ss:$16 sps:$4 sm:$0xff]  }
  0x72   :  { %588 = vmatpush1.bf16.msra.mxu0 %v1146_v20 }
  0x73   :  { %589 = vmatprep.subr.bf16.mxu0 %v1150_v23 }
  0x76   :  { %590 = vmatpush1.bf16.msra.mxu0 %v1152_v24 }
  0x77   :  { %591 = vmatprep.subr.bf16.mxu0 %v1156_v27 }
 0x140   :  { %v762_v29 = vpop.f32.mrb[0].mxu0 }
 0x141   :  { %v184_v30 = vadd.f32 %v762_v29, %v673_v28  ;;  %v178_v31 = vpop.f32.mrb[1].mxu0  ;;  %v850_v29 = vld [vmem:[#allocation8 + $0x84] ss:$16 sps:$4 sm:$0xff]  }
 0x142   :  { %v179_v32 = vadd.f32 %v673_v28, %v178_v31  ;;  %v1162_v31 = vld [vmem:[#allocation8 + $0x8c] ss:$16 sps:$4 sm:$0xff]   ;;  %540 = vmatprep.subr.bf16.mxu1 %v850_v29 }
 0x143   :  { %v198_v33 = vmul.f32 %v184_v30, %v184_v30 }
 0x144   :  { %v197_v34 = vmul.f32 %v179_v32, %v179_v32  ;;  %v765_v35 = vpop.f32.mrb[2].mxu0 }
 0x145   :  { %v202_v36 = vmul.f32 %v198_v33, %v184_v30  ;;  %v194_v37 = vadd.f32 %v765_v35, %v673_v28  ;;  %v188_v38 = vpop.f32.mrb[3].mxu0  ;;  %v856_v33 = vld [vmem:[#allocation8 + $0xa4] ss:$16 sps:$4 sm:$0xff]   ;;  %v1168_v35 = vld [vmem:[#allocation8 + $0xac] ss:$16 sps:$4 sm:$0xff]  }
 0x146   :  { %v201_v39 = vmul.f32 %v197_v34, %v179_v32  ;;  %v189_v40 = vadd.f32 %v673_v28, %v188_v38  ;;  %v1158_v28 = vld [vmem:[#allocation8 + $0x68] ss:$16 sps:$4 sm:$0xff]   ;;  %v858_v34 = vld [vmem:[#allocation8 + $0xa0] ss:$16 sps:$4 sm:$0xff]  }
 0x147   :  { %v206_v41 = vmul.f32 0.044715, %v202_v36  ;;  %v200_v42 = vmul.f32 %v194_v37, %v194_v37  ;;  %592 = vmatpush1.bf16.msra.mxu0 %v1158_v28  ;;  %v1170_v36 = vld [vmem:[#allocation8 + $0xa8] ss:$16 sps:$4 sm:$0xff]   ;;  %v864_v38 = vld [vmem:[#allocation8 + $0xc0] ss:$16 sps:$4 sm:$0xff]  }
 0x148   :  { %v205_v43 = vmul.f32 0.044715, %v201_v39  ;;  %v199_v44 = vmul.f32 %v189_v40, %v189_v40  ;;  %593 = vmatprep.subr.bf16.mxu0 %v1162_v31  ;;  %v1173_v39 = vld [vmem:[#allocation8 + $0xcc] ss:$16 sps:$4 sm:$0xff]  }
 0x149   :  { %v210_v45 = vadd.f32 %v206_v41, %v184_v30  ;;  %v204_v46 = vmul.f32 %v200_v42, %v194_v37  ;;  %v868_v41 = vld [vmem:[#allocation8 + $0xe4] ss:$16 sps:$4 sm:$0xff]   ;;  %v1179_v42 = vld [vmem:[#allocation8 + $0xec] ss:$16 sps:$4 sm:$0xff]  }
 0x14a   :  { %v209_v47 = vadd.f32 %v205_v43, %v179_v32  ;;  %v203_v48 = vmul.f32 %v199_v44, %v189_v40  ;;  %v1016_v43 = vmov 0   ;;  %v870_v44 = vld [vmem:[#allocation8 + $0xe0] ss:$16 sps:$4 sm:$0xff]  }
 0x14b   :  { %v214_v49 = vmul.f32 0.7978846, %v210_v45  ;;  %v208_v50 = vmul.f32 0.044715, %v204_v46  ;;  %564 = vmatprep.mubr.bf16.mxu1 %v1016_v43  ;;  %617 = vmatprep.mubr.bf16.mxu0 %v1016_v43  ;;  %v1184_v45 = vld [vmem:[#allocation8 + $0xe8] ss:$16 sps:$4 sm:$0xff]  }
 0x14c   :  { %v213_v51 = vmul.f32 0.7978846, %v209_v47  ;;  %v207_v52 = vmul.f32 0.044715, %v203_v48 }
 0x14d   :  { %v212_v53 = vadd.f32 %v208_v50, %v194_v37  ;;  %874 = vtanh.f32 %v214_v49 }
 0x14e   :  { %v211_v54 = vadd.f32 %v207_v52, %v189_v40  ;;  %876 = vtanh.f32 %v213_v51 }
 0x14f   :  { %v216_v55 = vmul.f32 0.7978846, %v212_v53 }
 0x150   :  { %v215_v56 = vmul.f32 0.7978846, %v211_v54 }
 0x151   :  { %878 = vtanh.f32 %v216_v55 }
 0x152   :  { %880 = vtanh.f32 %v215_v56 }
 0x157   :  { %v875_v57 = vpop.eup %874 }
 0x158   :  { %v877_v58 = vpop.eup %876  ;;  %v222_v59 = vadd.f32 1.0, %v875_v57 }
 0x159   :  { %v221_v60 = vadd.f32 1.0, %v877_v58 }
 0x15a   :  { %v226_v63 = vmul.f32 0.5, %v222_v59 }
 0x15b   :  { %v879_v61 = vpop.eup %878  ;;  %v225_v62 = vmul.f32 0.5, %v221_v60 }
 0x15c   :  { %v881_v0 = vpop.eup %880  ;;  %v1123_v4 = vmul.f32 %v226_v63, %v184_v30  ;;  %v224_v5 = vadd.f32 1.0, %v879_v61  ;;  %v852_v30 = vld [vmem:[#allocation8 + $0x80] ss:$16 sps:$4 sm:$0xff]  }
 0x15d   :  { %v1118_v1 = vmul.f32 %v225_v62, %v179_v32  ;;  %v223_v2 = vadd.f32 1.0, %v881_v0  ;;  %v1164_v32 = vld [vmem:[#allocation8 + $0x88] ss:$16 sps:$4 sm:$0xff]   ;;  %541 = vmatpush1.bf16.msra.mxu1 %v852_v30 }
 0x15e   :  { %v247_v7 = vmul.f32 %v1123_v4, %v1123_v4  ;;  %v228_v8 = vmul.f32 0.5, %v224_v5  ;;  %594 = vmatpush1.bf16.msra.mxu0 %v1164_v32  ;;  %542 = vmatprep.subr.bf16.mxu1 %v856_v33 }
 0x15f   :  { %233 = vadd.xlane.f32.xlu0 %v1118_v1  ;;  %v246_v3 = vmul.f32 %v1118_v1, %v1118_v1  ;;  %v227_v6 = vmul.f32 0.5, %v223_v2  ;;  %595 = vmatprep.subr.bf16.mxu0 %v1168_v35 }
 0x160   :  { %v1131_v10 = vmul.f32 %v228_v8, %v194_v37  ;;  %v862_v37 = vld [vmem:[#allocation8 + $0xc4] ss:$16 sps:$4 sm:$0xff]  }
 0x161   :  { %250 = vadd.xlane.f32.xlu1 %v246_v3  ;;  %v1128_v9 = vmul.f32 %v227_v6, %v189_v40  ;;  %543 = vmatpush1.bf16.msra.mxu1 %v858_v34  ;;  %v1176_v40 = vld [vmem:[#allocation8 + $0xc8] ss:$16 sps:$4 sm:$0xff]  }
 0x162   :  { %v249_v12 = vmul.f32 %v1131_v10, %v1131_v10  ;;  %596 = vmatpush1.bf16.msra.mxu0 %v1170_v36  ;;  %544 = vmatprep.subr.bf16.mxu1 %v862_v37 }
 0x163   :  { %235 = vadd.xlane.f32.xlu0 %v1123_v4  ;;  %v248_v11 = vmul.f32 %v1128_v9, %v1128_v9  ;;  %597 = vmatprep.subr.bf16.mxu0 %v1173_v39 }
 0x165   :  { %252 = vadd.xlane.f32.xlu1 %v247_v7  ;;  %545 = vmatpush1.bf16.msra.mxu1 %v864_v38 }
 0x166   :  { %598 = vmatpush1.bf16.msra.mxu0 %v1176_v40  ;;  %546 = vmatprep.subr.bf16.mxu1 %v868_v41 }
 0x167   :  { %237 = vadd.xlane.f32.xlu0 %v1128_v9  ;;  %599 = vmatprep.subr.bf16.mxu0 %v1179_v42 }
 0x169   :  { %239 = vadd.xlane.f32.xlu1 %v1131_v10  ;;  %547 = vmatpush1.bf16.msra.mxu1 %v870_v44 }
 0x16a   :  { %600 = vmatpush1.bf16.msra.mxu0 %v1184_v45  ;;  %798 = vmatprep.subr.bf16.mxu1 %v1138_v15 }
 0x16b   :  { %254 = vadd.xlane.f32.xlu0 %v248_v11 }
 0x16d   :  { %256 = vadd.xlane.f32.xlu1 %v249_v12 }
 0x1ec   :  { %v234_v46 = vpop.xlane.xlu0 %233 }
 0x1ed   :  { %v242_v47 = vmul.f32 0.0078125, %v234_v46 }
 0x1ee   :  { %v251_v48 = vpop.xlane.xlu1 %250 }
 0x1ef   :  { %v262_v49 = vmul.f32 %v242_v47, %v242_v47  ;;  %v258_v50 = vmul.f32 0.0078125, %v251_v48 }
 0x1f0   :  { %v236_v51 = vpop.xlane.xlu0 %235 }
 0x1f1   :  { %v266_v52 = vsub.f32 %v258_v50, %v262_v49  ;;  %v243_v53 = vmul.f32 0.0078125, %v236_v51 }
 0x1f2   :  { %v253_v54 = vpop.xlane.xlu1 %252 }
 0x1f3   :  { %v271_v55 = vadd.f32 1e-12, %v266_v52  ;;  %v263_v56 = vmul.f32 %v243_v53, %v243_v53  ;;  %v259_v57 = vmul.f32 0.0078125, %v253_v54 }
 0x1f4   :  { %v238_v58 = vpop.xlane.xlu0 %237 }
 0x1f5   :  { %882 = vrsqrt.f32 %v271_v55  ;;  %v267_v59 = vsub.f32 %v259_v57, %v263_v56  ;;  %v244_v60 = vmul.f32 0.0078125, %v238_v58 }
 0x1f6   :  { %v240_v61 = vpop.xlane.xlu1 %239 }
 0x1f7   :  { %v272_v62 = vadd.f32 1e-12, %v267_v59  ;;  %v245_v63 = vmul.f32 0.0078125, %v240_v61  ;;  %v264_v2 = vmul.f32 %v244_v60, %v244_v60 }
 0x1f8   :  { %v255_v0 = vpop.xlane.xlu0 %254 }
 0x1f9   :  { %884 = vrsqrt.f32 %v272_v62  ;;  %v260_v3 = vmul.f32 0.0078125, %v255_v0  ;;  %v265_v6 = vmul.f32 %v245_v63, %v245_v63 }
 0x1fa   :  { %v257_v5 = vpop.xlane.xlu1 %256 }
 0x1fb   :  { %v268_v7 = vsub.f32 %v260_v3, %v264_v2  ;;  %v261_v8 = vmul.f32 0.0078125, %v257_v5 }
 0x1fd   :  { %v273_v11 = vadd.f32 1e-12, %v268_v7  ;;  %v269_v12 = vsub.f32 %v261_v8, %v265_v6 }
 0x1ff   :  { %v883_v14 = vpop.eup %882  ;;  %886 = vrsqrt.f32 %v273_v11  ;;  %v274_v15 = vadd.f32 1e-12, %v269_v12 }
 0x200   :  { %v285_v17 = vmul.f32 %v883_v14, %v674_v13 }
 0x201   :  { %888 = vrsqrt.f32 %v274_v15 }
 0x202   :  { %v290_v18 = vmul.f32 %v285_v17, %v242_v47  ;;  %v304_v33 = vmul.f32 %v285_v17, %v1118_v1 }
 0x203   :  { %v885_v21 = vpop.eup %884 }
 0x204   :  { %v286_v25 = vmul.f32 %v885_v21, %v674_v13  ;;  %v300_v29 = vsub.f32 %v675_v22, %v290_v18 }
 0x206   :  { %v291_v26 = vmul.f32 %v286_v25, %v243_v53  ;;  %v305_v34 = vmul.f32 %v286_v25, %v1123_v4  ;;  %v308_v38 = vadd.f32 %v304_v33, %v300_v29 }
 0x208   :  { %v301_v30 = vsub.f32 %v675_v22, %v291_v26 }
 0x209   :  { %v887_v37 = vpop.eup %886 }
 0x20a   :  { %v309_v41 = vadd.f32 %v305_v34, %v301_v30  ;;  %v287_v44 = vmul.f32 %v887_v37, %v674_v13 }
 0x20b   :  { %v889_v46 = vpop.eup %888 }
 0x20c   :  { %v312_v48 = vpack.c.bf16 %v309_v41, %v308_v38  ;;  %v288_v47 = vmul.f32 %v889_v46, %v674_v13  ;;  %v292_v49 = vmul.f32 %v287_v44, %v244_v60  ;;  %v306_v4 = vmul.f32 %v287_v44, %v1128_v9 }
 0x20d   :  { %v352_v9 = vlaneseq }
 0x20e   :  { %565 = vmatmul.mubr.bf16.vlgmr.msra.gmra.mrb[0].mxu1 %v312_v48  ;;  %618 = vmatmul.mubr.bf16.vlgmr.msra.gmra.mrb[4].mxu0 %v312_v48  ;;  %v293_v50 = vmul.f32 %v288_v47, %v245_v63  ;;  %v302_v51 = vsub.f32 %v675_v22, %v292_v49  ;;  %v307_v52 = vmul.f32 %v288_v47, %v1131_v10 }
 0x20f   :  { %806 = vmatpush1.bf16.msra.mxu1 %v1140_v16  ;;  %574 = vmatprep.mubr.bf16.mxu1 %v1016_v43  ;;  %v353_v10 = vshrl.u32 %v352_v9, 7 }
 0x210   :  { %799 = vmatprep.subr.bf16.mxu1 %v1144_v19  ;;  %v303_v1 = vsub.f32 %v675_v22, %v293_v50  ;;  %v310_v53 = vadd.f32 %v306_v4, %v302_v51 }
 0x211   :  { %v354_v16 = vsub.s32 0, %v353_v10  ;;  %v362_v19 = vsub.s32 2, %v353_v10 }
 0x212   :  { %v311_v54 = vadd.f32 %v307_v52, %v303_v1 }
 0x213   :  { %807 = vmatpush1.bf16.msra.mxu1 %v1146_v20  ;;  %v350_v20 = vld [vmem:[#allocation9] sm:$0xf] }
 0x214   :  { %800 = vmatprep.subr.bf16.mxu1 %v1150_v23  ;;  %v313_v55 = vpack.c.bf16 %v311_v54, %v310_v53  ;;  %v358_v23 = vsub.s32 1, %v353_v10 }
 0x216   :  { %575 = vmatmul.mubr.bf16.gmra.mrb[4].mxu1 %v313_v55 }
 0x217   :  { %808 = vmatpush1.bf16.msra.mxu1 %v1152_v24  ;;  %627 = vmatprep.mubr.bf16.mxu1 %v1016_v43  ;;  %v366_v24 = vsub.s32 3, %v353_v10 }
 0x218   :  { %801 = vmatprep.subr.bf16.mxu1 %v1156_v27  ;;  %v355_v27 = vrot.slane %v350_v20, %v354_v16 }
 0x21b   :  { %809 = vmatpush1.bf16.msra.mxu1 %v1158_v28  ;;  %v363_v28 = vrot.slane %v350_v20, %v362_v19 }
 0x21c   :  { %802 = vmatprep.subr.bf16.mxu1 %v1162_v31  ;;  %v359_v31 = vrot.slane %v350_v20, %v358_v23 }
 0x21f   :  { %810 = vmatpush1.bf16.msra.mxu1 %v1164_v32  ;;  %v367_v32 = vrot.slane %v350_v20, %v366_v24 }
 0x220   :  { %803 = vmatprep.subr.bf16.mxu1 %v1168_v35 }
 0x223   :  { %811 = vmatpush1.bf16.msra.mxu1 %v1170_v36 }
 0x224   :  { %804 = vmatprep.subr.bf16.mxu1 %v1173_v39 }
 0x227   :  { %812 = vmatpush1.bf16.msra.mxu1 %v1176_v40 }
 0x228   :  { %805 = vmatprep.subr.bf16.mxu1 %v1179_v42 }
 0x22b   :  { %813 = vmatpush1.bf16.msra.mxu1 %v1184_v45 }
 0x22e   :  { %628 = vmatmul.mubr.bf16.vlgmr.msra.gmra.mrb[8].mxu1 %v313_v55 }
 0x2e1   :  { %v566_v35 = vpop.f32.mrb[0].mxu1  ;;  %v619_v36 = vpop.f32.mrb[4].mxu0 }
 0x2e2   :  { %v567_v39 = vadd.f32 %v566_v35, %v355_v27  ;;  %v620_v40 = vadd.f32 %v619_v36, %v363_v28  ;;  %v568_v43 = vpop.f32.mrb[1].mxu1  ;;  %v621_v42 = vpop.f32.mrb[5].mxu0 }
 0x2e3   :  { %v569_v56 = vadd.f32 %v568_v43, %v359_v31  ;;  %v622_v45 = vadd.f32 %v621_v42, %v367_v32  ;;  %v570_v57 = vpop.f32.mrb[2].mxu1  ;;  %v623_v58 = vpop.f32.mrb[6].mxu0 }
 0x2e4   :  { %638 = vst [vmem:[#allocation11] sm:$0xff] %v567_v39  ;;  %640 = vst [vmem:[#allocation11 + $0x10] sm:$0xff] %v620_v40  ;;  %v571_v59 = vadd.f32 %v570_v57, %v355_v27  ;;  %v624_v60 = vadd.f32 %v623_v58, %v363_v28  ;;  %v572_v61 = vpop.f32.mrb[3].mxu1  ;;  %v625_v62 = vpop.f32.mrb[7].mxu0 }
 0x2e5   :  { %639 = vst [vmem:[#allocation11 + $0x8] sm:$0xff] %v569_v56  ;;  %641 = vst [vmem:[#allocation11 + $0x18] sm:$0xff] %v622_v45  ;;  %v573_v63 = vadd.f32 %v572_v61, %v359_v31  ;;  %v626_v0 = vadd.f32 %v625_v62, %v367_v32 }
 0x2e6   :  { %642 = vst [vmem:[#allocation11 + $0x20] sm:$0xff] %v571_v59  ;;  %644 = vst [vmem:[#allocation11 + $0x30] sm:$0xff] %v624_v60 }
 0x2e7   :  { %643 = vst [vmem:[#allocation11 + $0x28] sm:$0xff] %v573_v63  ;;  %645 = vst [vmem:[#allocation11 + $0x38] sm:$0xff] %v626_v0 }
 0x2e9   :  { %v576_v2 = vpop.f32.mrb[4].mxu1 }
 0x2ea   :  { %v577_v3 = vadd.f32 %v576_v2, %v355_v27  ;;  %v578_v5 = vpop.f32.mrb[5].mxu1 }
 0x2eb   :  { %v579_v6 = vadd.f32 %v578_v5, %v359_v31  ;;  %v580_v7 = vpop.f32.mrb[6].mxu1 }
 0x2ec   :  { %646 = vst [vmem:[#allocation11 + $0x40] sm:$0xff] %v577_v3  ;;  %v581_v8 = vadd.f32 %v580_v7, %v355_v27  ;;  %v582_v11 = vpop.f32.mrb[7].mxu1 }
 0x2ed   :  { %647 = vst [vmem:[#allocation11 + $0x48] sm:$0xff] %v579_v6  ;;  %v583_v12 = vadd.f32 %v582_v11, %v359_v31 }
 0x2ee   :  { %650 = vst [vmem:[#allocation11 + $0x60] sm:$0xff] %v581_v8 }
 0x2ef   :  { %651 = vst [vmem:[#allocation11 + $0x68] sm:$0xff] %v583_v12 }
 0x301   :  { %v629_v13 = vpop.f32.mrb[8].mxu1 }
 0x302   :  { %v630_v14 = vadd.f32 %v629_v13, %v363_v28  ;;  %v631_v15 = vpop.f32.mrb[9].mxu1 }
 0x303   :  { %v632_v17 = vadd.f32 %v631_v15, %v367_v32  ;;  %v633_v18 = vpop.f32.mrb[10].mxu1 }
 0x304   :  { %648 = vst [vmem:[#allocation11 + $0x50] sm:$0xff] %v630_v14  ;;  %v634_v21 = vadd.f32 %v633_v18, %v363_v28  ;;  %v635_v22 = vpop.f32.mrb[11].mxu1 }
 0x305   :  { %649 = vst [vmem:[#allocation11 + $0x58] sm:$0xff] %v632_v17  ;;  %v636_v25 = vadd.f32 %v635_v22, %v367_v32 }
 0x306   :  { %652 = vst [vmem:[#allocation11 + $0x70] sm:$0xff] %v634_v21 }
 0x307   :  { %653 = vst [vmem:[#allocation11 + $0x78] sm:$0xff] %v636_v25 }
 0x308   :  { %989 = shalt.err (!%p986_p8)
}
 0x309   :  { %s990_s11 = scalar_lea.hbm %s1235_s7, 2048 }
 0x30a   :  { %p991_p9 = scmp.ne.s32.totalorder %s1235_s7, %s990_s11  ;;  %p994_p10 = scmp.lt.u32.totalorder %s990_s11, %s1235_s7 }
 0x30c   :  { %p996_p11 = pnand %p994_p10, %p991_p9 }
 0x30e   :  { %999 = shalt.err (!%p996_p11)
}
 0x30f   :  { %s1018_s13 = smov 512   ;;  %s1019_s14 = smov 32  }
 0x310   :  { %665 = dma.vmem_to_hbm [thread:$0]  %s660_s4, 2048, %s1235_s7, [#allocation5], %s1018_s13, %s1018_s13, %s1019_s14  }
 0x311   :  { %1006 = dma.done.wait [#allocation5], 2048  }
 0x312   :  { %1007 = vsyncadd [#allocation5], 4294965248 }
 0x313   :  { %669 = vsyncpa [#allocation4], 1 }
 0x314   :  { %670 = vsyncpa [#allocation7], 1 }
 0x315   :  { %671 = vsyncpa [#allocation10], 1 }
 0x316   :  { %672 = vsyncpa [#allocation5], 1 }

</bundles_post_ra>
